<compile_context>
chip_gen: v7x
topology: tpu7x:2x2x1
jax: 0.10.0
libtpu: 0.0.40
codegen_flags: <defaults>
</compile_context>

<pallas_src>
import functools

import jax
import jax.numpy as jnp
from jax.experimental import pallas as pl
from jax.experimental.pallas import tpu as pltpu


def _round_up(x, m):
    return (x + m - 1) // m * m


def _tpu_vmem_capacity_bytes():
    try:
        return int(pltpu.get_tpu_info().vmem_capacity_bytes)
    except Exception:
        return 128 * 1024 * 1024  # v5e/v6e default if query unavailable


def channel_gate_kernel(x_ref, w1_ref, b1_ref, w2_ref, b2_ref, out_ref,
                        sum_acc, max_acc, *, hw_total, hw_tile, lane_width):
    hw_idx = pl.program_id(1)
    last = pl.num_programs(1) - 1
    n_sub = hw_tile // lane_width
    needs_mask = (hw_total % hw_tile) != 0

    @pl.when(hw_idx == 0)
    def _init():
        sum_acc[...] = jnp.zeros_like(sum_acc)
        max_acc[...] = jnp.full_like(max_acc, -jnp.inf)

    def _accumulate(masked):
        # Within-lane accumulation: each 128-lane slab is added/maxed
        # element-wise into the (b_tile, C, lane_width) accumulators (pure VPU,
        # no per-step cross-lane reduce / relayout).
        for s in range(n_sub):
            piece = x_ref[:, :, s * lane_width:(s + 1) * lane_width]
            piece = piece.astype(jnp.float32)          # (b_tile, C, lane_width)
            if masked:
                lane = jax.lax.broadcasted_iota(jnp.int32, piece.shape, dimension=2)
                valid = (hw_idx * hw_tile + s * lane_width + lane) < hw_total
                sum_acc[...] += jnp.where(valid, piece, 0.0)
                max_acc[...] = jnp.maximum(max_acc[...],
                                           jnp.where(valid, piece, -jnp.inf))
            else:
                sum_acc[...] += piece
                max_acc[...] = jnp.maximum(max_acc[...], piece)

    if needs_mask:
        # Mask only the (single) partial last spatial tile; keep the
        # steady-state loop at load + add + max.
        @pl.when(hw_idx < last)
        def _steady():
            _accumulate(masked=False)

        @pl.when(hw_idx == last)
        def _tail():
            _accumulate(masked=True)
    else:
        _accumulate(masked=False)

    @pl.when(hw_idx == last)
    def _finalize():
        # One cross-lane reduce per batch tile (XLU), then the tiny fused MLP.
        sum_c = jnp.sum(sum_acc[...], axis=-1)                   # (b_tile, C)
        max_c = jnp.max(max_acc[...], axis=-1)                   # (b_tile, C)
        avg_pool = sum_c * (1.0 / float(hw_total))
        bt = avg_pool.shape[0]

        # NOTE: rows belonging to a padded (partial) last batch tile compute on
        # Pallas edge-padding garbage here; they are discarded on writeback.
        pooled = jnp.concatenate([avg_pool, max_c], axis=0)      # (2*bt, C)
        h = jnp.dot(pooled, w1_ref[...],
                    preferred_element_type=jnp.float32) + b1_ref[...]
        h = jnp.maximum(h, 0.0)                                  # ReLU
        att = jnp.dot(h, w2_ref[...],
                      preferred_element_type=jnp.float32) + b2_ref[...]

        att_sum = att[:bt, :] + att[bt:, :]                      # (b_tile, C)
        out_ref[...] = jax.nn.sigmoid(att_sum).astype(out_ref.dtype)


def channel_gate(x, w1, b1, w2, b2, *, b_tile=None, hw_tile=None,
                 hw_tile_cap=2048):
    """x: (B, C, H, W) NCHW. Weights in PyTorch Linear convention:
       w1: (hidden, C), b1: (hidden,), w2: (C, hidden), b2: (C,).
       Returns the gate scale of shape (B, C, 1, 1)."""
    B, C, H, W = x.shape
    HW = H * W
    hidden = w1.shape[0]
    itemsize = jnp.dtype(x.dtype).itemsize

    # ---- generation-aware VMEM budget -------------------------------------
    vmem_cap = _tpu_vmem_capacity_bytes()
    is_small_vmem = vmem_cap <= 80 * 1024 * 1024      # v7x-class (64 MiB / TC)
    if is_small_vmem:
        x_buf_budget = 16 * 1024 * 1024               # per x buffer (x2 pipelined)
        vmem_limit = min(48 * 1024 * 1024, (vmem_cap * 3) // 4)
        num_tc = 2                                    # v7x has 2 TensorCores
    else:
        x_buf_budget = 24 * 1024 * 1024
        vmem_limit = min(96 * 1024 * 1024, (vmem_cap * 3) // 4)
        num_tc = 1

    # ---- tile selection -----------------------------------------------------
    if b_tile is None:
        b_tile = min(B, 8)
        if num_tc > 1 and B >= num_tc:
            # Give the "parallel" batch axis >= num_tc steps so both cores work.
            b_tile = min(b_tile, pl.cdiv(B, num_tc))

    if hw_tile is None:
        if HW < 128:
            hw_tile = HW                               # full (legal) lane extent
        else:
            hw_pad = _round_up(HW, 128)

            def _fit(bt):
                lanes = x_buf_budget // (bt * C * itemsize)
                return max(128, min(hw_pad, hw_tile_cap, (lanes // 128) * 128))

            hw_tile = _fit(b_tile)
            # Prefer shrinking b_tile before hw_tile so hw_tile stays >= 512.
            min_hw = min(512, hw_pad, hw_tile_cap)
            while hw_tile < min_hw and b_tile > 1:
                b_tile = max(1, b_tile // 2)
                hw_tile = _fit(b_tile)

    lane_width = 128 if (hw_tile >= 128 and hw_tile % 128 == 0) else hw_tile
    grid = (pl.cdiv(B, b_tile), pl.cdiv(HW, hw_tile))

    # ---- inputs -------------------------------------------------------------
    x_flat = x.reshape(B, C, HW)
    w1_t = jnp.transpose(w1)            # (C, hidden)
    w2_t = jnp.transpose(w2)            # (hidden, C)
    b1_2d = b1.reshape(1, hidden)
    b2_2d = b2.reshape(1, C)

    # x streams over (batch, spatial); weights stay resident (constant index).
    x_spec = pl.BlockSpec((b_tile, C, hw_tile), lambda b, s: (b, 0, s))
    w1_spec = pl.BlockSpec((C, hidden), lambda b, s: (0, 0))
    b1_spec = pl.BlockSpec((1, hidden), lambda b, s: (0, 0))
    w2_spec = pl.BlockSpec((hidden, C), lambda b, s: (0, 0))
    b2_spec = pl.BlockSpec((1, C), lambda b, s: (0, 0))
    out_spec = pl.BlockSpec((b_tile, C), lambda b, s: (b, 0))

    kernel = functools.partial(channel_gate_kernel, hw_total=HW,
                               hw_tile=hw_tile, lane_width=lane_width)

    cost = pl.CostEstimate(
        flops=2 * B * C * HW + 2 * (2 * B) * (C * hidden + hidden * C),
        transcendentals=B * C,
        bytes_accessed=B * C * HW * itemsize
        + (C * hidden + hidden + hidden * C + C) * 4
        + B * C * itemsize,
    )

    out = pl.pallas_call(
        kernel,
        out_shape=jax.ShapeDtypeStruct((B, C), x.dtype),
        grid_spec=pltpu.PrefetchScalarGridSpec(
            num_scalar_prefetch=0,
            grid=grid,
            in_specs=[x_spec, w1_spec, b1_spec, w2_spec, b2_spec],
            out_specs=out_spec,
            scratch_shapes=[
                pltpu.VMEM((b_tile, C, lane_width), jnp.float32),   # running sum
                pltpu.VMEM((b_tile, C, lane_width), jnp.float32),   # running max
            ],
        ),
        compiler_params=pltpu.CompilerParams(
            dimension_semantics=("parallel", "arbitrary"),
            vmem_limit_bytes=vmem_limit),
        cost_estimate=cost,
    )(x_flat, w1_t, b1_2d, w2_t, b2_2d)

    return out.reshape(B, C, 1, 1)


def channel_gate_ref(x, w1, b1, w2, b2):
    """Pure-JAX reference matching the PyTorch forward (pool_types=['avg','max'])."""
    avg_pool = jnp.mean(x, axis=(2, 3))
    max_pool = jnp.max(x, axis=(2, 3))

    def mlp(p):
        h = jnp.maximum(p @ w1.T + b1, 0.0)
        return h @ w2.T + b2

    s = jax.nn.sigmoid(mlp(avg_pool) + mlp(max_pool))
    return s[:, :, None, None]


if __name__ == "__main__":
    # gate_channels=64, reduction=16 -> hidden=4
    C = 64
    reduction_ratio = 16
    hidden = C // reduction_ratio

    key = jax.random.PRNGKey(0)
    k1, k2, k3, k4, kx1, kx2 = jax.random.split(key, 6)

    # PyTorch Linear shapes: (out, in)
    w1 = jax.random.normal(k1, (hidden, C), dtype=jnp.float32) * 0.1
    b1 = jax.random.normal(k2, (hidden,), dtype=jnp.float32) * 0.1
    w2 = jax.random.normal(k3, (C, hidden), dtype=jnp.float32) * 0.1
    b2 = jax.random.normal(k4, (C,), dtype=jnp.float32) * 0.1

    # Test 1: HW = 256, hw_tile=128 forced -> multi-step spatial accumulate path.
    x1 = jax.random.normal(kx1, (2, C, 16, 16), dtype=jnp.float32)
    scale1 = jax.block_until_ready(channel_gate(x1, w1, b1, w2, b2, hw_tile=128))
    ref1 = channel_gate_ref(x1, w1, b1, w2, b2)
    assert scale1.shape == (2, C, 1, 1)
    assert jnp.allclose(scale1, ref1, atol=1e-5, rtol=1e-5), "mismatch (multi-step)"

    # Test 2: HW = 196 (14x14, not a multiple of 128), default tiling ->
    # 128-multiple hw_tile with masked partial tile (the realistic CNN case).
    x2 = jax.random.normal(kx2, (2, C, 14, 14), dtype=jnp.float32)
    scale2 = jax.block_until_ready(channel_gate(x2, w1, b1, w2, b2))
    ref2 = channel_gate_ref(x2, w1, b1, w2, b2)
    assert scale2.shape == (2, C, 1, 1)
    assert jnp.allclose(scale2, ref2, atol=1e-5, rtol=1e-5), "mismatch (masked tail)"

    print("KERNEL_OK")
</pallas_src>

<mosaic_0001>
module attributes {stable_mosaic.version = 11 : i64} {
  func.func @channel_gate_kernel(%arg0: i32, %arg1: i32, %arg2: memref<2x64x128xf32, #tpu.memory_space<vmem>>, %arg3: memref<64x4xf32, #tpu.memory_space<vmem>>, %arg4: memref<1x4xf32, #tpu.memory_space<vmem>>, %arg5: memref<4x64xf32, #tpu.memory_space<vmem>>, %arg6: memref<1x64xf32, #tpu.memory_space<vmem>>, %arg7: memref<2x64xf32, #tpu.memory_space<vmem>>, %arg8: memref<2x64x128xf32, #tpu.memory_space<vmem>>, %arg9: memref<2x64x128xf32, #tpu.memory_space<vmem>>) attributes {dimension_semantics = [#tpu.dimension_semantics<parallel>, #tpu.dimension_semantics<arbitrary>], iteration_bounds = array<i64: 1, 2>, scalar_prefetch = 0 : i64, scratch_operands = 2 : i64, tpu.core_type = #tpu.core_type<tc>, window_params = [{transform_indices = @transform_0, window_bounds = array<i64: 2, 64, 128>}, {pipeline_mode = #tpu.pipeline_mode<synchronous>, transform_indices = @transform_1, window_bounds = array<i64: 64, 4>}, {pipeline_mode = #tpu.pipeline_mode<synchronous>, transform_indices = @transform_2, window_bounds = array<i64: 1, 4>}, {pipeline_mode = #tpu.pipeline_mode<synchronous>, transform_indices = @transform_3, window_bounds = array<i64: 4, 64>}, {pipeline_mode = #tpu.pipeline_mode<synchronous>, transform_indices = @transform_4, window_bounds = array<i64: 1, 64>}, {transform_indices = @transform_5, window_bounds = array<i64: 2, 64>}]} {
    %c0_i32 = arith.constant 0 : i32
    %0 = arith.cmpi eq, %arg1, %c0_i32 : i32
    %1 = arith.extui %0 : i1 to i32
    %c0_i32_0 = arith.constant 0 : i32
    %2 = arith.cmpi ne, %1, %c0_i32_0 : i32
    scf.if %2 {
      %cst = arith.constant 0.000000e+00 : f32
      %13 = vector.broadcast %cst : f32 to vector<2x64x128xf32>
      %c0_16 = arith.constant 0 : index
      %c0_17 = arith.constant 0 : index
      %c0_18 = arith.constant 0 : index
      %14 = vector.load %arg8[%c0_16, %c0_17, %c0_18] : memref<2x64x128xf32, #tpu.memory_space<vmem>>, vector<2x64x128xf32>
      tpu.vector_store %arg8[%c0_16, %c0_17, %c0_18], %13 {strides = array<i32>} : memref<2x64x128xf32, #tpu.memory_space<vmem>>, vector<2x64x128xf32>,
      %cst_19 = arith.constant 0xFF800000 : f32
      %15 = vector.broadcast %cst_19 : f32 to vector<2x64x128xf32>
      %c0_20 = arith.constant 0 : index
      %c0_21 = arith.constant 0 : index
      %c0_22 = arith.constant 0 : index
      %16 = vector.load %arg9[%c0_20, %c0_21, %c0_22] : memref<2x64x128xf32, #tpu.memory_space<vmem>>, vector<2x64x128xf32>
      tpu.vector_store %arg9[%c0_20, %c0_21, %c0_22], %15 {strides = array<i32>} : memref<2x64x128xf32, #tpu.memory_space<vmem>>, vector<2x64x128xf32>,
    } else {
    }
    %c0 = arith.constant 0 : index
    %c0_1 = arith.constant 0 : index
    %c0_2 = arith.constant 0 : index
    %3 = vector.load %arg2[%c0, %c0_1, %c0_2] : memref<2x64x128xf32, #tpu.memory_space<vmem>>, vector<2x64x128xf32>
    %c0_3 = arith.constant 0 : index
    %c0_4 = arith.constant 0 : index
    %c0_5 = arith.constant 0 : index
    %4 = vector.load %arg8[%c0_3, %c0_4, %c0_5] : memref<2x64x128xf32, #tpu.memory_space<vmem>>, vector<2x64x128xf32>
    %5 = arith.addf %4, %3 : vector<2x64x128xf32>
    %c0_6 = arith.constant 0 : index
    %c0_7 = arith.constant 0 : index
    %c0_8 = arith.constant 0 : index
    %6 = vector.load %arg8[%c0_6, %c0_7, %c0_8] : memref<2x64x128xf32, #tpu.memory_space<vmem>>, vector<2x64x128xf32>
    tpu.vector_store %arg8[%c0_6, %c0_7, %c0_8], %5 {strides = array<i32>} : memref<2x64x128xf32, #tpu.memory_space<vmem>>, vector<2x64x128xf32>,
    %c0_9 = arith.constant 0 : index
    %c0_10 = arith.constant 0 : index
    %c0_11 = arith.constant 0 : index
    %7 = vector.load %arg9[%c0_9, %c0_10, %c0_11] : memref<2x64x128xf32, #tpu.memory_space<vmem>>, vector<2x64x128xf32>
    %8 = arith.maximumf %7, %3 : vector<2x64x128xf32>
    %c0_12 = arith.constant 0 : index
    %c0_13 = arith.constant 0 : index
    %c0_14 = arith.constant 0 : index
    %9 = vector.load %arg9[%c0_12, %c0_13, %c0_14] : memref<2x64x128xf32, #tpu.memory_space<vmem>>, vector<2x64x128xf32>
    tpu.vector_store %arg9[%c0_12, %c0_13, %c0_14], %8 {strides = array<i32>} : memref<2x64x128xf32, #tpu.memory_space<vmem>>, vector<2x64x128xf32>,
    %c1_i32 = arith.constant 1 : i32
    %10 = arith.cmpi eq, %arg1, %c1_i32 : i32
    %11 = arith.extui %10 : i1 to i32
    %c0_i32_15 = arith.constant 0 : i32
    %12 = arith.cmpi ne, %11, %c0_i32_15 : i32
    scf.if %12 {
      %c0_16 = arith.constant 0 : index
      %c0_17 = arith.constant 0 : index
      %c0_18 = arith.constant 0 : index
      %13 = vector.load %arg8[%c0_16, %c0_17, %c0_18] : memref<2x64x128xf32, #tpu.memory_space<vmem>>, vector<2x64x128xf32>
      %cst = arith.constant dense<0.000000e+00> : vector<2x64xf32>
      %14 = vector.multi_reduction <add>, %13, %cst [2] : vector<2x64x128xf32> to vector<2x64xf32>
      %c0_19 = arith.constant 0 : index
      %c0_20 = arith.constant 0 : index
      %c0_21 = arith.constant 0 : index
      %15 = vector.load %arg9[%c0_19, %c0_20, %c0_21] : memref<2x64x128xf32, #tpu.memory_space<vmem>>, vector<2x64x128xf32>
      %cst_22 = arith.constant dense<0xFF800000> : vector<2x64xf32>
      %16 = vector.multi_reduction <maximumf>, %15, %cst_22 [2] : vector<2x64x128xf32> to vector<2x64xf32>
      %cst_23 = arith.constant 3.906250e-03 : f32
      %17 = vector.broadcast %cst_23 : f32 to vector<2x64xf32>
      %18 = arith.mulf %14, %17 : vector<2x64xf32>
      %19 = tpu.concatenate %18, %16 in 0 : vector<2x64xf32>, vector<2x64xf32> -> vector<4x64xf32>
      %c0_24 = arith.constant 0 : index
      %c0_25 = arith.constant 0 : index
      %20 = vector.load %arg3[%c0_24, %c0_25] : memref<64x4xf32, #tpu.memory_space<vmem>>, vector<64x4xf32>
      %cst_26 = arith.constant dense<0.000000e+00> : vector<4x4xf32>
      %21 = tpu.matmul %19, %20, %cst_26 {dimension_numbers = #tpu.dot_dimension_numbers<[1], [0], [0], [1], [0, 0, 1, 1], [], []>} : vector<4x64xf32>, vector<64x4xf32>, vector<4x4xf32> -> vector<4x4xf32>
      %c0_27 = arith.constant 0 : index
      %c0_28 = arith.constant 0 : index
      %22 = vector.load %arg4[%c0_27, %c0_28] : memref<1x4xf32, #tpu.memory_space<vmem>>, vector<1x4xf32>
      %23 = vector.broadcast %22 : vector<1x4xf32> to vector<4x4xf32>
      %24 = arith.addf %21, %23 : vector<4x4xf32>
      %cst_29 = arith.constant 0.000000e+00 : f32
      %25 = vector.broadcast %cst_29 : f32 to vector<4x4xf32>
      %26 = arith.maximumf %24, %25 : vector<4x4xf32>
      %c0_30 = arith.constant 0 : index
      %c0_31 = arith.constant 0 : index
      %27 = vector.load %arg5[%c0_30, %c0_31] : memref<4x64xf32, #tpu.memory_space<vmem>>, vector<4x64xf32>
      %cst_32 = arith.constant dense<0.000000e+00> : vector<4x64xf32>
      %28 = tpu.matmul %26, %27, %cst_32 {dimension_numbers = #tpu.dot_dimension_numbers<[1], [0], [0], [1], [0, 0, 1, 1], [], []>} : vector<4x4xf32>, vector<4x64xf32>, vector<4x64xf32> -> vector<4x64xf32>
      %c0_33 = arith.constant 0 : index
      %c0_34 = arith.constant 0 : index
      %29 = vector.load %arg6[%c0_33, %c0_34] : memref<1x64xf32, #tpu.memory_space<vmem>>, vector<1x64xf32>
      %30 = vector.broadcast %29 : vector<1x64xf32> to vector<4x64xf32>
      %31 = arith.addf %28, %30 : vector<4x64xf32>
      %32 = vector.extract_strided_slice %31 {offsets = [0, 0], sizes = [2, 64], strides = [1, 1]} : vector<4x64xf32> to vector<2x64xf32>
      %33 = vector.extract_strided_slice %31 {offsets = [2, 0], sizes = [2, 64], strides = [1, 1]} : vector<4x64xf32> to vector<2x64xf32>
      %34 = arith.addf %32, %33 : vector<2x64xf32>
      %35 = arith.negf %34 : vector<2x64xf32>
      %36 = math.exp %35 : vector<2x64xf32>
      %cst_35 = arith.constant 1.000000e+00 : f32
      %37 = vector.broadcast %cst_35 : f32 to vector<2x64xf32>
      %38 = arith.addf %37, %36 : vector<2x64xf32>
      %39 = arith.divf %37, %38 : vector<2x64xf32>
      %c0_36 = arith.constant 0 : index
      %c0_37 = arith.constant 0 : index
      %40 = vector.load %arg7[%c0_36, %c0_37] : memref<2x64xf32, #tpu.memory_space<vmem>>, vector<2x64xf32>
      tpu.vector_store %arg7[%c0_36, %c0_37], %39 {strides = array<i32>} : memref<2x64xf32, #tpu.memory_space<vmem>>, vector<2x64xf32>,
    } else {
    }
    return
  }
  func.func @transform_0(%arg0: i32, %arg1: i32) -> (i32, i32, i32) {
    %c0_i32 = arith.constant 0 : i32
    %c0_i32_0 = arith.constant 0 : i32
    return %arg0, %c0_i32, %arg1 : i32, i32, i32
  }
  func.func @transform_1(%arg0: i32, %arg1: i32) -> (i32, i32) {
    %c0_i32 = arith.constant 0 : i32
    %c0_i32_0 = arith.constant 0 : i32
    %c0_i32_1 = arith.constant 0 : i32
    return %c0_i32, %c0_i32_0 : i32, i32
  }
  func.func @transform_2(%arg0: i32, %arg1: i32) -> (i32, i32) {
    %c0_i32 = arith.constant 0 : i32
    %c0_i32_0 = arith.constant 0 : i32
    %c0_i32_1 = arith.constant 0 : i32
    return %c0_i32, %c0_i32_0 : i32, i32
  }
  func.func @transform_3(%arg0: i32, %arg1: i32) -> (i32, i32) {
    %c0_i32 = arith.constant 0 : i32
    %c0_i32_0 = arith.constant 0 : i32
    %c0_i32_1 = arith.constant 0 : i32
    return %c0_i32, %c0_i32_0 : i32, i32
  }
  func.func @transform_4(%arg0: i32, %arg1: i32) -> (i32, i32) {
    %c0_i32 = arith.constant 0 : i32
    %c0_i32_0 = arith.constant 0 : i32
    %c0_i32_1 = arith.constant 0 : i32
    return %c0_i32, %c0_i32_0 : i32, i32
  }
  func.func @transform_5(%arg0: i32, %arg1: i32) -> (i32, i32) {
    %c0_i32 = arith.constant 0 : i32
    %c0_i32_0 = arith.constant 0 : i32
    return %arg0, %c0_i32 : i32, i32
  }
}

</mosaic_0001>

<bundles_post_ra>
// kernel: tpu_custom_call.1
= control target key start
LH: loop header
LB: loop body
LE: loop exit
PB: predicated region body
PF: predicated region fallthrough
CT: control target
= control target key end

     0   :  { %10 = vsyncpa [#allocation5], 0  ;;  %s1997_s0 = inlined_call_operand.hbm [shape: f32[2,64,256], index: 0, kind: input, shape index: {}]   ;;  %s1998_s1 = inlined_call_operand.hbm [shape: f32[64,4], index: 1, kind: input, shape index: {}]   ;;  %s1999_s2 = inlined_call_operand.hbm [shape: f32[1,4], index: 2, kind: input, shape index: {}]   ;;  %s2000_s3 = inlined_call_operand.hbm [shape: f32[4,64], index: 3, kind: input, shape index: {}]   ;;  %s2001_s4 = inlined_call_operand.hbm [shape: f32[1,64], index: 4, kind: input, shape index: {}]   ;;  %s2002_s5 = inlined_call_operand.hbm [shape: f32[2,64], index: 5, kind: output, shape index: {}]  }
   0x1   :  { %12 = vsyncpa [#allocation5 + $0x1], 0 }
   0x2   :  { %13 = vsyncpa [#allocation8], 0 }
   0x3   :  { %14 = vsyncpa [#allocation11], 0 }
   0x4   :  { %15 = vsyncpa [#allocation6], 0  ;;  %s1544_s18 = smov 0   ;;  %s1546_s19 = smov 0  }
   0x5   :  { %s1548_s20 = smov 0   ;;  %s1550_s21 = smov 0  }
   0x6   :  { %s1552_s22 = smov 0   ;;  %s1554_s23 = smov 0  }
   0x7 LB: > { %s1079_s24 = sadd.s32 4294967295, %s1498_s23   ;;  %p55_p0 = scmp.ne.s32.totalorder %s1482_s19, %s1478_s18  ;;  %s1498_s23 = sphi %s1554_s23, %s21_s23   ;;  %s1494_s22 = sphi %s1552_s22, %s2022_s22   ;;  %s1490_s21 = sphi %s1550_s21, %s2021_s21   ;;  %s1486_s20 = sphi %s1548_s20, %s2020_s20   ;;  %s1482_s19 = sphi %s1546_s19, %s2019_s19   ;;  %s1478_s18 = sphi %s1544_s18, %s2018_s18  }
   0x8   : > { %p1576_p1 = scmp.eq.s32.totalorder %s1079_s24, 0  ;;  %p1080_p2 = scmp.ge.s32.totalorder %s1498_s23, 1 }
   0x9   : > { %p176_p3 = scmp.lt.s32.totalorder %s1498_s23, 3  ;;  %s1500_s28 = smov [#allocation7]  }
   0xa   : > { %s2007_s25 = scalar_select %p1576_p1, 1, 0 }
   0xb   : > { %p1584_p4 = por %p1576_p1, %p55_p0  ;;  %p1588_p5 = pnand %p1080_p2, %p176_p3 }
   0xc   : > { %s188_s29 = sshll.u32 %s1500_s28, 4  ;;  %s1501_s6 = smov [#allocation10]   ;;  %s1592_s29 = int_to_ptr.vmem [resolvable:$true] %s188_s29 }
   0xd   : > { %s2008_s26 = scalar_select %p1584_p4, 1, 0 }
   0xe   : > { %s2009_s27 = scalar_select %p1588_p5, 1, 0 }
   0xf   : > { %p1175_p6 = pneg %p1588_p5  ;;  %s213_s7 = sshll.u32 %s1501_s6, 4  ;;  %s1602_s7 = int_to_ptr.vmem [resolvable:$true] %s213_s7 }
  0x10   : > { %s1502_s8 = smov [#allocation9]   ;;  %s1268_s12 = scalar_lea.hbm %s1998_s1, 1024 }
  0x11   : > { %p1598_p7 = pnand %p1175_p6, %p1576_p1  ;;  %s1604_s9 = sshll.u32 %s1502_s8, 4  ;;  %s203_s9 = int_to_ptr.vmem [resolvable:$true] %s1604_s9 }
  0x12   : > { %p1269_p8 = scmp.ne.s32.totalorder %s1998_s1, %s1268_s12  ;;  %p1275_p12 = scmp.lt.u32.totalorder %s1268_s12, %s1998_s1 }
  0x13   : > { %p1614_p9 = pneg %p1598_p7 }
  0x15   : > { %p1271_p10 = pnand %p1614_p9, %p1269_p8 }
  0x17   : > { %p1272_p11 = pneg %p1271_p10 }
  0x19   : > { %p1277_p13 = pnand %p1275_p12, %p1272_p11 }
  0x1b   : > { %1280 = shalt.err (!%p1277_p13)
}
  0x1c   : > { %s1281_s18 = scalar_lea.vmem %s1592_s29, 1024  ;;  %p1289_p6 = scmp.lt.s32.totalorder %s1592_s29, %s1592_s29 }
  0x1d   : > { %p1282_p0 = scmp.ne.s32.totalorder %s1592_s29, %s1281_s18  ;;  %p1290_p1 = scmp.lt.s32.totalorder %s1281_s18, %s1281_s18 }
  0x1f   : > { %p1284_p2 = pnand %p1282_p0, %p1614_p9  ;;  %p1291_p8 = por %p1290_p1, %p1289_p6 }
  0x21   : > { %p1285_p3 = pneg %p1284_p2 }
  0x23   : > { %p1292_p10 = pnand %p1291_p8, %p1285_p3 }
  0x25   : > { %1295 = shalt.err (!%p1292_p10)
}
  0x26   : > { %s1503_s28 = smov 128   ;;  %s1504_s6 = smov 8  }
  0x27   : > { %1178 = dma.hbm_to_vmem [thread:$0]  (!%p1598_p7), %s1998_s1, 1024, %s1592_s29, [#allocation8], %s1503_s28, %s1503_s28, %s1504_s6  }
  0x28   : > { %s1296_s13 = scalar_lea.hbm %s2000_s3, 64 }
  0x29   : > { %p1297_p1 = scmp.ne.s32.totalorder %s2000_s3, %s1296_s13  ;;  %p1303_p13 = scmp.lt.u32.totalorder %s1296_s13, %s2000_s3 }
  0x2b   : > { %p1299_p11 = pnand %p1297_p1, %p1614_p9 }
  0x2d   : > { %p1300_p12 = pneg %p1299_p11 }
  0x2f   : > { %p1305_p0 = pnand %p1303_p13, %p1300_p12 }
  0x31   : > { %1308 = shalt.err (!%p1305_p0)
}
  0x32   : > { %s1309_s29 = scalar_lea.vmem %s1602_s7, 64  ;;  %p1317_p8 = scmp.lt.s32.totalorder %s1602_s7, %s1602_s7 }
  0x33   : > { %p1310_p2 = scmp.ne.s32.totalorder %s1602_s7, %s1309_s29  ;;  %p1318_p10 = scmp.lt.s32.totalorder %s1309_s29, %s1309_s29 }
  0x35   : > { %p1312_p3 = pnand %p1310_p2, %p1614_p9  ;;  %p1319_p1 = por %p1318_p10, %p1317_p8 }
  0x37   : > { %p1313_p6 = pneg %p1312_p3 }
  0x39   : > { %p1320_p11 = pnand %p1319_p1, %p1313_p6 }
  0x3b   : > { %1323 = shalt.err (!%p1320_p11)
}
  0x3c   : > { %1184 = dma.hbm_to_vmem [thread:$0]  (!%p1598_p7), %s2000_s3, 64, %s1602_s7, [#allocation11]  }
  0x3d   : > { %s1324_s13 = scalar_lea.hbm %s1999_s2, 16 }
  0x3e   : > { %p1325_p12 = scmp.ne.s32.totalorder %s1999_s2, %s1324_s13  ;;  %p1331_p2 = scmp.lt.u32.totalorder %s1324_s13, %s1999_s2 }
  0x40   : > { %p1327_p13 = pnand %p1325_p12, %p1614_p9 }
  0x42   : > { %p1328_p0 = pneg %p1327_p13 }
  0x44   : > { %p1333_p3 = pnand %p1331_p2, %p1328_p0 }
  0x46   : > { %1336 = shalt.err (!%p1333_p3)
}
  0x47   : > { %s1337_s29 = scalar_lea.vmem %s203_s9, 16  ;;  %s1344_s7 = scalar_lea.vmem %s203_s9, 32 }
  0x48   : > { %p1338_p6 = scmp.ne.s32.totalorder %s203_s9, %s1337_s29  ;;  %p1345_p1 = scmp.lt.s32.totalorder %s203_s9, %s203_s9 }
  0x49   : > { %p1346_p11 = scmp.lt.s32.totalorder %s1344_s7, %s1337_s29 }
  0x4a   : > { %p1340_p8 = pnand %p1338_p6, %p1614_p9 }
  0x4b   : > { %p1347_p4 = por %p1346_p11, %p1345_p1 }
  0x4c   : > { %p1341_p10 = pneg %p1340_p8 }
  0x4e   : > { %p1348_p5 = pnand %p1347_p4, %p1341_p10 }
  0x50   : > { %1351 = shalt.err (!%p1348_p5)
}
  0x51   : > { %1181 = dma.hbm_to_vmem [thread:$0]  (!%p1598_p7), %s1999_s2, 16, %s203_s9, [#allocation8]  }
  0x52   : > { %s1505_s11 = smov [#allocation12]   ;;  %s1352_s16 = scalar_lea.hbm %s2001_s4, 16 }
  0x53   : > { %s224_s12 = sshll.u32 %s1505_s11, 4  ;;  %p1353_p12 = scmp.ne.s32.totalorder %s2001_s4, %s1352_s16  ;;  %s225_s12 = int_to_ptr.vmem [resolvable:$true] %s224_s12 }
  0x54   : > { %p1359_p13 = scmp.lt.u32.totalorder %s1352_s16, %s2001_s4 }
  0x55   : > { %p1355_p4 = pnand %p1353_p12, %p1614_p9 }
  0x57   : > { %p1356_p5 = pneg %p1355_p4 }
  0x59   : > { %p1361_p0 = pnand %p1359_p13, %p1356_p5 }
  0x5b   : > { %1364 = shalt.err (!%p1361_p0)
}
  0x5c   : > { %s1365_s9 = scalar_lea.vmem %s225_s12, 16  ;;  %s1372_s8 = scalar_lea.vmem %s225_s12, 32 }
  0x5d   : > { %p1366_p2 = scmp.ne.s32.totalorder %s225_s12, %s1365_s9  ;;  %p1373_p8 = scmp.lt.s32.totalorder %s225_s12, %s225_s12 }
  0x5e   : > { %p1374_p10 = scmp.lt.s32.totalorder %s1372_s8, %s1365_s9 }
  0x5f   : > { %p1368_p3 = pnand %p1366_p2, %p1614_p9 }
  0x60   : > { %p1375_p1 = por %p1374_p10, %p1373_p8 }
  0x61   : > { %p1369_p6 = pneg %p1368_p3 }
  0x63   : > { %p1376_p11 = pnand %p1375_p1, %p1369_p6 }
  0x65   : > { %1379 = shalt.err (!%p1376_p11)
}
  0x66   : > { %1187 = dma.hbm_to_vmem [thread:$0]  (!%p1598_p7), %s2001_s4, 16, %s225_s12, [#allocation11]  }
  0x67   : > { %s30_s15 = sadd.s32 1, %s1494_s22  ;;  %s42_s13 = sadd.s32 1, %s1486_s20 }
  0x68   : > { %p31_p9 = scmp.ge.s32.totalorder %s30_s15, 2  ;;  %p49_p12 = scmp.ne.s32.totalorder %s1486_s20, %s1482_s19 }
  0x69   : > { %p50_p4 = scmp.eq.s32.totalorder %s1498_s23, 0  ;;  %p1196_p5 = scmp.lt.s32.totalorder %s1498_s23, 2 }
  0x6a   : > { %s2024_s15 = smov (%p31_p9, %s30_s15), 0  ;;  %s235_s30 = sand.u32 1, %s1486_s20  }
  0x6b   : > { %p51_p13 = por %p50_p4, %p49_p12  ;;  %s38_s14 = ssub.s32 %s1494_s22, %s2024_s15 }
  0x6c   : > { %p40_p0 = scmp.eq.s32.totalorder %s38_s14, 0  ;;  %s1086_s16 = sshll.u32 %s235_s30, 7 }
  0x6d   : > { %s1087_s17 = sshll.u32 %s1494_s22, 7  ;;  %s239_s9 = scalar_lea.vmem [#allocation4], %s1086_s16 }
  0x6e   : > { %s1711_s18 = scalar_select %p40_p0, %s1486_s20, %s42_s13  }
  0x6f   : > { %s1716_s7 = scalar_lea.hbm %s1997_s0, %s1087_s17  ;;  %s248_s8 = sshll.u32 %s239_s9, 4  ;;  %s1718_s8 = int_to_ptr.vmem [resolvable:$true] %s248_s8 }
  0x70   : > { %p1722_p7 = pnand %p1196_p5, %p51_p13  ;;  %s1726_s11 = scalar_lea.sflag [#allocation5], %s235_s30 }
  0x71   : > { %s1380_s13 = scalar_lea.hbm %s1716_s7, 2048  ;;  %s1385_s17 = scalar_lea.hbm %s1997_s0, 4096 }
  0x72   : > { %p1381_p2 = scmp.ne.s32.totalorder %s1716_s7, %s1380_s13  ;;  %p1382_p3 = pneg %p1722_p7 }
  0x73   : > { %p1386_p10 = scmp.lt.u32.totalorder %s1716_s7, %s1997_s0  ;;  %p1387_p1 = scmp.lt.u32.totalorder %s1385_s17, %s1380_s13 }
  0x74   : > { %p1383_p6 = pnand %p1382_p3, %p1381_p2  ;;  %p1389_p9 = scmp.lt.u32.totalorder %s1380_s13, %s1716_s7 }
  0x75   : > { %p1388_p11 = por %p1387_p1, %p1386_p10 }
  0x76   : > { %p1384_p8 = pneg %p1383_p6 }
  0x77   : > { %p1390_p12 = por %p1389_p9, %p1388_p11 }
  0x79   : > { %p1391_p4 = pnand %p1390_p12, %p1384_p8 }
  0x7b   : > { %1394 = shalt.err (!%p1391_p4)
}
  0x7c   : > { %s1395_s30 = scalar_lea.vmem %s1718_s8, 2048  ;;  %s1506_s9 = smov [#allocation4]  }
  0x7d   : > { %p1396_p5 = scmp.ne.s32.totalorder %s1718_s8, %s1395_s30  ;;  %s1400_s14 = sshll.u32 %s1506_s9, 4  ;;  %s1401_s14 = int_to_ptr.vmem [resolvable:$false] %s1400_s14 }
  0x7e   : > { %s1402_s16 = scalar_lea.vmem %s1401_s14, 4096  ;;  %p1403_p2 = scmp.lt.s32.totalorder %s1718_s8, %s1401_s14 }
  0x7f   : > { %p1398_p13 = pnand %p1396_p5, %p1382_p3  ;;  %p1404_p6 = scmp.lt.s32.totalorder %s1402_s16, %s1395_s30 }
  0x81   : > { %p1399_p0 = pneg %p1398_p13  ;;  %p1405_p10 = por %p1404_p6, %p1403_p2 }
  0x83   : > { %p1406_p1 = pnand %p1405_p10, %p1399_p0 }
  0x85   : > { %1409 = shalt.err (!%p1406_p1)
}
  0x86   : > { %s1507_s13 = smov 256   ;;  %p2013_p3 = scmp.ne.s32.totalorder %s2009_s27, 0 }
  0x87   : > { %1191 = dma.hbm_to_vmem [thread:$0]  (!%p1722_p7), %s1716_s7, 2048, %s1718_s8, %s1726_s11, %s1507_s13, %s1503_s28, %s1504_s6  }
  0x88   : > { %260 = sbr.rel (%p2013_p3) target bundleno = 881 (0x371), region = 40  ;;  %s262_s17 = sand.u32 (!%p2013_p3), 1, %s1482_s19  }
  0x89   : > { %s1089_s29 = sshll.u32 (!%p2013_p3), %s262_s17, 7  ;;  %s263_s12 = scalar_lea.sflag (!%p2013_p3), [#allocation5], %s262_s17 }
  0x8a   : > { %s1759_s30 = scalar_lea.vmem (!%p2013_p3), [#allocation4], %s1089_s29  ;;  %p2014_p8 = scmp.ne.s32.totalorder (!%p2013_p3), %s2008_s26, 0 }
  0x8f   : > { %1461 = dma.done.wait (%p2014_p8), %s263_s12, 2048  }
  0x90   : > { %1463 = vsyncadd (%p2014_p8), %s263_s12, 4294965248  ;;  %p2015_p11 = scmp.ne.s32.totalorder %s2007_s25, 0 }
  0x92   : > { %1465 = dma.done.wait (%p2015_p11), [#allocation8], 1040  }
  0x93   : > { %1467 = vsyncadd (%p2015_p11), [#allocation8], 4294966256 }
  0x94   : > { %1469 = dma.done.wait (%p2015_p11), [#allocation11], 80  }
  0x95   : > { %1471 = vsyncadd (%p2015_p11), [#allocation11], 4294967216  ;;  %p1094_p7 = scmp.ne.s32.totalorder %s1490_s21, 0 }
  0x96   : > { %v1508_v0 = vmov (!%p1094_p7), 0.0   ;;  %v1509_v1 = vmov (!%p1094_p7), -inf  }
  0x97   : > { %308 = sbr.rel (%p1094_p7) target bundleno = 167 (0xa7), region = 64  ;;  %309 = vst [vmem:[#allocation2] sm:$0xff] (!%p1094_p7), %v1508_v0  ;;  %310 = vst [vmem:[#allocation2 + $0x8] sm:$0xff] (!%p1094_p7), %v1508_v0 }
  0x98   : > { %311 = vst [vmem:[#allocation2 + $0x10] sm:$0xff] (!%p1094_p7), %v1508_v0  ;;  %312 = vst [vmem:[#allocation2 + $0x18] sm:$0xff] (!%p1094_p7), %v1508_v0 }
  0x99   : > { %313 = vst [vmem:[#allocation2 + $0x20] sm:$0xff] (!%p1094_p7), %v1508_v0  ;;  %314 = vst [vmem:[#allocation2 + $0x28] sm:$0xff] (!%p1094_p7), %v1508_v0 }
  0x9a   : > { %315 = vst [vmem:[#allocation2 + $0x30] sm:$0xff] (!%p1094_p7), %v1508_v0  ;;  %316 = vst [vmem:[#allocation2 + $0x38] sm:$0xff] (!%p1094_p7), %v1508_v0 }
  0x9b   : > { %317 = vst [vmem:[#allocation2 + $0x40] sm:$0xff] (!%p1094_p7), %v1508_v0  ;;  %318 = vst [vmem:[#allocation2 + $0x48] sm:$0xff] (!%p1094_p7), %v1508_v0 }
  0x9c   : > { %319 = vst [vmem:[#allocation2 + $0x50] sm:$0xff] (!%p1094_p7), %v1508_v0  ;;  %320 = vst [vmem:[#allocation2 + $0x58] sm:$0xff] (!%p1094_p7), %v1508_v0 }
  0x9d   : > { %321 = vst [vmem:[#allocation2 + $0x60] sm:$0xff] (!%p1094_p7), %v1508_v0  ;;  %322 = vst [vmem:[#allocation2 + $0x68] sm:$0xff] (!%p1094_p7), %v1508_v0 }
  0x9e   : > { %323 = vst [vmem:[#allocation2 + $0x70] sm:$0xff] %v1508_v0  ;;  %324 = vst [vmem:[#allocation2 + $0x78] sm:$0xff] %v1508_v0 }
  0x9f   : > { %325 = vst [vmem:[#allocation3] sm:$0xff] %v1509_v1  ;;  %326 = vst [vmem:[#allocation3 + $0x8] sm:$0xff] %v1509_v1 }
  0xa0   : > { %327 = vst [vmem:[#allocation3 + $0x10] sm:$0xff] %v1509_v1  ;;  %328 = vst [vmem:[#allocation3 + $0x18] sm:$0xff] %v1509_v1 }
  0xa1   : > { %329 = vst [vmem:[#allocation3 + $0x20] sm:$0xff] %v1509_v1  ;;  %330 = vst [vmem:[#allocation3 + $0x28] sm:$0xff] %v1509_v1 }
  0xa2   : > { %331 = vst [vmem:[#allocation3 + $0x30] sm:$0xff] %v1509_v1  ;;  %332 = vst [vmem:[#allocation3 + $0x38] sm:$0xff] %v1509_v1 }
  0xa3   : > { %333 = vst [vmem:[#allocation3 + $0x40] sm:$0xff] %v1509_v1  ;;  %334 = vst [vmem:[#allocation3 + $0x48] sm:$0xff] %v1509_v1 }
  0xa4   : > { %335 = vst [vmem:[#allocation3 + $0x50] sm:$0xff] %v1509_v1  ;;  %336 = vst [vmem:[#allocation3 + $0x58] sm:$0xff] %v1509_v1 }
  0xa5   : > { %337 = vst [vmem:[#allocation3 + $0x60] sm:$0xff] %v1509_v1  ;;  %338 = vst [vmem:[#allocation3 + $0x68] sm:$0xff] %v1509_v1 }
  0xa6   : > { %339 = vst [vmem:[#allocation3 + $0x70] sm:$0xff] %v1509_v1  ;;  %340 = vst [vmem:[#allocation3 + $0x78] sm:$0xff] %v1509_v1 }
  0xa7 PF: > { %v1775_v2 = vld [vmem:[%s1759_s30] sm:$0xff]  ;;  %v1778_v4 = vld [vmem:[%s1759_s30 + $0x8] sm:$0xff]  ;;  %v1782_v7 = vld [vmem:[%s1759_s30 + $0x10] sm:$0xff]  ;;  %p1095_p9 = scmp.ne.s32.totalorder %s1490_s21, 1 }
  0xa8   : > { %v357_v3 = vld [vmem:[#allocation2] sm:$0xff]  ;;  %v358_v6 = vld [vmem:[#allocation2 + $0x8] sm:$0xff]  ;;  %v359_v8 = vld [vmem:[#allocation2 + $0x10] sm:$0xff]  ;;  %vm1511_vm0 = vmmov (!%p1095_p9), 0   ;;  %vm596_vm1 = vcmask (!%p1095_p9), 130112   ;;  %vm603_vm2 = vcmask (!%p1095_p9), 195712  }
  0xa9   : > { %v373_v5 = vadd.f32 %v357_v3, %v1775_v2  ;;  %v374_v9 = vadd.f32 %v358_v6, %v1778_v4  ;;  %v375_v10 = vadd.f32 %v359_v8, %v1782_v7  ;;  %v1787_v11 = vld [vmem:[%s1759_s30 + $0x18] sm:$0xff]  ;;  %v1790_v13 = vld [vmem:[%s1759_s30 + $0x20] sm:$0xff]  ;;  %v1794_v16 = vld [vmem:[%s1759_s30 + $0x28] sm:$0xff]  ;;  %vm610_vm3 = vcmask (!%p1095_p9), 261312  }
  0xaa   : > { %v360_v12 = vld [vmem:[#allocation2 + $0x18] sm:$0xff]  ;;  %v361_v15 = vld [vmem:[#allocation2 + $0x20] sm:$0xff]  ;;  %v362_v17 = vld [vmem:[#allocation2 + $0x28] sm:$0xff]  ;;  %vm617_vm4 = vcmask (!%p1095_p9), 326912   ;;  %vm624_vm5 = vcmask (!%p1095_p9), 392512   ;;  %vm631_vm6 = vcmask (!%p1095_p9), 458112  }
  0xab   : > { %389 = vst [vmem:[#allocation2] sm:$0xff] %v373_v5  ;;  %v376_v14 = vadd.f32 %v360_v12, %v1787_v11  ;;  %390 = vst [vmem:[#allocation2 + $0x8] sm:$0xff] %v374_v9  ;;  %v377_v18 = vadd.f32 %v361_v15, %v1790_v13  ;;  %v378_v19 = vadd.f32 %v362_v17, %v1794_v16  ;;  %v1799_v20 = vld [vmem:[%s1759_s30 + $0x30] sm:$0xff]  ;;  %v1802_v22 = vld [vmem:[%s1759_s30 + $0x38] sm:$0xff]  ;;  %vm638_vm7 = vcmask (!%p1095_p9), 523712  }
  0xac   : > { %391 = vst [vmem:[#allocation2 + $0x10] sm:$0xff] %v375_v10  ;;  %v363_v21 = vld [vmem:[#allocation2 + $0x30] sm:$0xff]  ;;  %v364_v24 = vld [vmem:[#allocation2 + $0x38] sm:$0xff]  ;;  %v1806_v25 = vld [vmem:[%s1759_s30 + $0x40] sm:$0xff]  ;;  %vm679_vm8 = vcmask (!%p1095_p9), 1041409   ;;  %vm776_vm9 = vcmask (!%p1095_p9), 1043459  }
  0xad   : > { %392 = vst [vmem:[#allocation2 + $0x18] sm:$0xff] %v376_v14  ;;  %v379_v23 = vadd.f32 %v363_v21, %v1799_v20  ;;  %v365_v26 = vld [vmem:[#allocation2 + $0x40] sm:$0xff]  ;;  %393 = vst [vmem:[#allocation2 + $0x20] sm:$0xff] %v377_v18  ;;  %v380_v27 = vadd.f32 %v364_v24, %v1802_v22  ;;  %v1811_v29 = vld [vmem:[%s1759_s30 + $0x48] sm:$0xff]  ;;  %vm779_vm10 = vcmask (!%p1095_p9), 1041408   ;;  %vm796_vm11 = vcmask (!%p1095_p9), 523264  }
  0xae   : > { %394 = vst [vmem:[#allocation2 + $0x28] sm:$0xff] %v378_v19  ;;  %v381_v28 = vadd.f32 %v365_v26, %v1806_v25  ;;  %v366_v30 = vld [vmem:[#allocation2 + $0x48] sm:$0xff]  ;;  %v1814_v31 = vld [vmem:[%s1759_s30 + $0x50] sm:$0xff]  ;;  %v1818_v34 = vld [vmem:[%s1759_s30 + $0x58] sm:$0xff]  ;;  %vm883_vm12 = vcmask (!%p1095_p9), 1043456   ;;  %vm879_vm13 = vcmask (!%p1095_p9), 31744  }
  0xaf   : > { %395 = vst [vmem:[#allocation2 + $0x30] sm:$0xff] %v379_v23  ;;  %v382_v32 = vadd.f32 %v366_v30, %v1811_v29  ;;  %v367_v33 = vld [vmem:[#allocation2 + $0x50] sm:$0xff]  ;;  %v368_v35 = vld [vmem:[#allocation2 + $0x58] sm:$0xff]  ;;  %396 = vst [vmem:[#allocation2 + $0x38] sm:$0xff] %v380_v27  ;;  %vm967_vm14 = vcmask (!%p1095_p9), 517120  }
  0xb0   : > { %397 = vst [vmem:[#allocation2 + $0x40] sm:$0xff] %v381_v28  ;;  %v383_v36 = vadd.f32 %v367_v33, %v1814_v31  ;;  %v384_v37 = vadd.f32 %v368_v35, %v1818_v34  ;;  %v1823_v38 = vld [vmem:[%s1759_s30 + $0x60] sm:$0xff]  ;;  %v354_v40 = vld [vmem:[%s1759_s30 + $0x68] sm:$0xff]  ;;  %v355_v43 = vld [vmem:[%s1759_s30 + $0x70] sm:$0xff] }
  0xb1   : > { %v369_v39 = vld [vmem:[#allocation2 + $0x60] sm:$0xff]  ;;  %398 = vst [vmem:[#allocation2 + $0x48] sm:$0xff] %v382_v32  ;;  %v370_v42 = vld [vmem:[#allocation2 + $0x68] sm:$0xff]  ;;  %v371_v44 = vld [vmem:[#allocation2 + $0x70] sm:$0xff] }
  0xb2   : > { %v385_v41 = vadd.f32 %v369_v39, %v1823_v38  ;;  %399 = vst [vmem:[#allocation2 + $0x50] sm:$0xff] %v383_v36  ;;  %400 = vst [vmem:[#allocation2 + $0x58] sm:$0xff] %v384_v37  ;;  %v386_v45 = vadd.f32 %v370_v42, %v354_v40  ;;  %v387_v46 = vadd.f32 %v371_v44, %v355_v43  ;;  %v356_v47 = vld [vmem:[%s1759_s30 + $0x78] sm:$0xff]  ;;  %v405_v49 = vld [vmem:[#allocation3] sm:$0xff] }
  0xb3   : > { %v372_v48 = vld [vmem:[#allocation2 + $0x78] sm:$0xff]  ;;  %v421_v51 = vmax.f32 %v405_v49, %v1775_v2  ;;  %v406_v52 = vld [vmem:[#allocation3 + $0x8] sm:$0xff]  ;;  %v407_v53 = vld [vmem:[#allocation3 + $0x10] sm:$0xff] }
  0xb4   : > { %401 = vst [vmem:[#allocation2 + $0x60] sm:$0xff] %v385_v41  ;;  %v388_v50 = vadd.f32 %v372_v48, %v356_v47  ;;  %v408_v54 = vld [vmem:[#allocation3 + $0x18] sm:$0xff]  ;;  %402 = vst [vmem:[#allocation2 + $0x68] sm:$0xff] %v386_v45  ;;  %v422_v55 = vmax.f32 %v406_v52, %v1778_v4  ;;  %v423_v56 = vmax.f32 %v407_v53, %v1782_v7  ;;  %v409_v58 = vld [vmem:[#allocation3 + $0x20] sm:$0xff]  ;;  %v1510_v53 = vmov (!%p1095_p9), 0.0|0.0  }
  0xb5   : > { %403 = vst [vmem:[#allocation2 + $0x70] sm:$0xff] %v387_v46  ;;  %v424_v57 = vmax.f32 %v408_v54, %v1787_v11  ;;  %v410_v59 = vld [vmem:[#allocation3 + $0x28] sm:$0xff]  ;;  %v411_v60 = vld [vmem:[#allocation3 + $0x30] sm:$0xff]  ;;  %437 = vst [vmem:[#allocation3] sm:$0xff] %v421_v51  ;;  %v425_v61 = vmax.f32 %v409_v58, %v1790_v13  ;;  %1141 = vmatprep.subr.bf16.mxu0 (!%p1095_p9), %v1510_v53 }
  0xb6   : > { %404 = vst [vmem:[#allocation2 + $0x78] sm:$0xff] %v388_v50  ;;  %v426_v62 = vmax.f32 %v410_v59, %v1794_v16  ;;  %v427_v63 = vmax.f32 %v411_v60, %v1799_v20  ;;  %v412_v0 = vld [vmem:[#allocation3 + $0x38] sm:$0xff]  ;;  %v413_v1 = vld [vmem:[#allocation3 + $0x40] sm:$0xff]  ;;  %v414_v2 = vld [vmem:[#allocation3 + $0x48] sm:$0xff] }
  0xb7   : > { %438 = vst [vmem:[#allocation3 + $0x8] sm:$0xff] %v422_v55  ;;  %439 = vst [vmem:[#allocation3 + $0x10] sm:$0xff] %v423_v56  ;;  %v428_v3 = vmax.f32 %v412_v0, %v1802_v22  ;;  %v429_v4 = vmax.f32 %v413_v1, %v1806_v25  ;;  %v430_v5 = vmax.f32 %v414_v2, %v1811_v29  ;;  %v415_v6 = vld [vmem:[#allocation3 + $0x50] sm:$0xff]  ;;  %v416_v7 = vld [vmem:[#allocation3 + $0x58] sm:$0xff] }
  0xb8   : > { %440 = vst [vmem:[#allocation3 + $0x18] sm:$0xff] %v424_v57  ;;  %v417_v8 = vld [vmem:[#allocation3 + $0x60] sm:$0xff]  ;;  %441 = vst [vmem:[#allocation3 + $0x20] sm:$0xff] %v425_v61  ;;  %v431_v9 = vmax.f32 %v415_v6, %v1814_v31  ;;  %v432_v10 = vmax.f32 %v416_v7, %v1818_v34  ;;  %v418_v12 = vld [vmem:[#allocation3 + $0x68] sm:$0xff]  ;;  %456 = sbr.rel (%p1095_p9) target bundleno = 856 (0x358), region = 68 }
  0xb9   : > { %442 = vst [vmem:[#allocation3 + $0x28] sm:$0xff] %v426_v62  ;;  %443 = vst [vmem:[#allocation3 + $0x30] sm:$0xff] %v427_v63  ;;  %v433_v11 = vmax.f32 %v417_v8, %v1823_v38  ;;  %v419_v13 = vld [vmem:[#allocation3 + $0x70] sm:$0xff]  ;;  %v420_v14 = vld [vmem:[#allocation3 + $0x78] sm:$0xff]  ;;  %v434_v15 = vmax.f32 %v418_v12, %v354_v40  ;;  %v1512_v63 = vmov (!%p1095_p9), 0.0  }
  0xba   : > { %444 = vst [vmem:[#allocation3 + $0x38] sm:$0xff] %v428_v3  ;;  %445 = vst [vmem:[#allocation3 + $0x40] sm:$0xff] %v429_v4  ;;  %v435_v16 = vmax.f32 %v419_v13, %v355_v43  ;;  %v436_v17 = vmax.f32 %v420_v14, %v356_v47  ;;  %v465_v18 = vld [vmem:[#allocation2 + $0x40] sm:$0xff] (!%p1095_p9)  ;;  %v466_v20 = vld [vmem:[#allocation2 + $0x48] sm:$0xff] (!%p1095_p9)  ;;  %1133 = vmatprep.mubr.msk.f32.mxu0 (!%p1095_p9), %vm1511_vm0, %v1512_v63  ;;  %1136 = vmatprep.subr.mxu1 (!%p1095_p9), %v1512_v63 }
  0xbb   : > { %446 = vst [vmem:[#allocation3 + $0x48] sm:$0xff] %v430_v5  ;;  %447 = vst [vmem:[#allocation3 + $0x50] sm:$0xff] %v431_v9  ;;  %v457_v19 = vld [vmem:[#allocation2] sm:$0xff] (!%p1095_p9)  ;;  %489 = vadd.xlane.f32.xlu1 (!%p1095_p9), %v465_v18  ;;  %v458_v21 = vld [vmem:[#allocation2 + $0x8] sm:$0xff] (!%p1095_p9)  ;;  %1138 = vmatprep.mubr.msk.f32.mxu1 (!%p1095_p9), %vm1511_vm0, %v1512_v63 }
  0xbc   : > { %448 = vst [vmem:[#allocation3 + $0x58] sm:$0xff] %v432_v10  ;;  %449 = vst [vmem:[#allocation3 + $0x60] sm:$0xff] %v433_v11  ;;  %473 = vadd.xlane.f32.xlu0 (!%p1095_p9), %v457_v19  ;;  %v467_v22 = vld [vmem:[#allocation2 + $0x50] sm:$0xff] (!%p1095_p9)  ;;  %v468_v24 = vld [vmem:[#allocation2 + $0x58] sm:$0xff] (!%p1095_p9) }
  0xbd   : > { %450 = vst [vmem:[#allocation3 + $0x68] sm:$0xff] %v434_v15  ;;  %451 = vst [vmem:[#allocation3 + $0x70] sm:$0xff] %v435_v16  ;;  %v459_v23 = vld [vmem:[#allocation2 + $0x10] sm:$0xff] (!%p1095_p9)  ;;  %v460_v25 = vld [vmem:[#allocation2 + $0x18] sm:$0xff] (!%p1095_p9)  ;;  %v585_v16 = vlaneseq (!%p1095_p9) }
  0xbe   : > { %452 = vst [vmem:[#allocation3 + $0x78] sm:$0xff] %v436_v17  ;;  %v506_v26 = vld [vmem:[#allocation3 + $0x8] sm:$0xff] (!%p1095_p9)  ;;  %v505_v27 = vld [vmem:[#allocation3] sm:$0xff] (!%p1095_p9)  ;;  %v507_v33 = vld [vmem:[#allocation3 + $0x10] sm:$0xff] (!%p1095_p9) }
  0xbf   : > { %491 = vadd.xlane.f32.xlu1 %v466_v20  ;;  %v469_v30 = vld [vmem:[#allocation2 + $0x60] sm:$0xff]  ;;  %v470_v34 = vld [vmem:[#allocation2 + $0x68] sm:$0xff]  ;;  %v508_v37 = vld [vmem:[#allocation3 + $0x18] sm:$0xff]  ;;  %v586_v19 = vand.u32 127, %v585_v16  ;;  %v588_v20 = vshrl.u32 %v585_v16, 7 }
  0xc0   : > { %475 = vadd.xlane.f32.xlu0 %v458_v21  ;;  %v461_v31 = vld [vmem:[#allocation2 + $0x20] sm:$0xff]  ;;  %v462_v35 = vld [vmem:[#allocation2 + $0x28] sm:$0xff]  ;;  %v471_v38 = vld [vmem:[#allocation2 + $0x70] sm:$0xff] }
  0xc1   : > { %v513_v29 = vld [vmem:[#allocation3 + $0x40] sm:$0xff]  ;;  %v463_v39 = vld [vmem:[#allocation2 + $0x30] sm:$0xff]  ;;  %v472_v42 = vld [vmem:[#allocation2 + $0x78] sm:$0xff]  ;;  %v591_v21 = vadd.s32 4294967288, %v586_v19 }
  0xc2   : > { %v514_v28 = vld [vmem:[#allocation3 + $0x48] sm:$0xff]  ;;  %v515_v32 = vld [vmem:[#allocation3 + $0x50] sm:$0xff]  ;;  %v509_v41 = vld [vmem:[#allocation3 + $0x20] sm:$0xff] }
  0xc3   : > { %493 = vadd.xlane.f32.xlu1 %v467_v22  ;;  %v516_v36 = vld [vmem:[#allocation3 + $0x58] sm:$0xff]  ;;  %v517_v40 = vld [vmem:[#allocation3 + $0x60] sm:$0xff]  ;;  %v510_v45 = vld [vmem:[#allocation3 + $0x28] sm:$0xff] }
  0xc4   : > { %477 = vadd.xlane.f32.xlu0 %v459_v23  ;;  %v464_v43 = vld [vmem:[#allocation2 + $0x38] sm:$0xff]  ;;  %v518_v44 = vld [vmem:[#allocation3 + $0x68] sm:$0xff]  ;;  %v519_v46 = vld [vmem:[#allocation3 + $0x70] sm:$0xff] }
  0xc5   : > { %v511_v47 = vld [vmem:[#allocation3 + $0x30] sm:$0xff]  ;;  %v520_v48 = vld [vmem:[#allocation3 + $0x78] sm:$0xff]  ;;  %v781_v50 = vld [vmem:[#allocation7] sm:$0xff] }
  0xc6   : > { %v512_v49 = vld [vmem:[#allocation3 + $0x38] sm:$0xff]  ;;  %v782_v51 = vld [vmem:[#allocation7 + $0x8] sm:$0xff]  ;;  %v783_v54 = vld [vmem:[#allocation7 + $0x10] sm:$0xff] }
  0xc7   : > { %495 = vadd.xlane.f32.xlu1 %v468_v24  ;;  %v1142_v52 = vpack.c.bf16 %v782_v51, %v781_v50  ;;  %v784_v55 = vld [vmem:[#allocation7 + $0x18] sm:$0xff]  ;;  %v785_v57 = vld [vmem:[#allocation7 + $0x20] sm:$0xff]  ;;  %v786_v58 = vld [vmem:[#allocation7 + $0x28] sm:$0xff]  ;;  %v598_v24 = vadd.s32 4294967280, %v586_v19 }
  0xc8   : > { %479 = vadd.xlane.f32.xlu0 %v460_v25  ;;  %v1145_v56 = vpack.c.bf16 %v784_v55, %v783_v54  ;;  %v1148_v59 = vpack.c.bf16 %v786_v58, %v785_v57  ;;  %v787_v60 = vld [vmem:[#allocation7 + $0x30] sm:$0xff]  ;;  %v788_v61 = vld [vmem:[#allocation7 + $0x38] sm:$0xff]  ;;  %v605_v25 = vadd.s32 4294967272, %v586_v19 }
  0xc9   : > { %1143 = vmatpush3.bf16.msra.mxu0 %v1142_v52  ;;  %v1151_v62 = vpack.c.bf16 %v788_v61, %v787_v60 }
  0xca   : > { %1144 = vmatprep.subr.bf16.mxu0 %v1510_v53 }
  0xcb   : > { %523 = vmax.xlane.f32.xlu1 %v506_v26  ;;  %v1859_v26 = vsub.s32 %v586_v19, %v588_v20 }
  0xcc   : > { %521 = vmax.xlane.f32.xlu0 %v505_v27  ;;  %v1861_v27 = vsub.s32 %v591_v21, %v588_v20 }
  0xcd   : > { %1146 = vmatpush3.bf16.msra.mxu0 %v1145_v56 }
  0xce   : > { %1147 = vmatprep.subr.bf16.mxu0 %v1510_v53 }
  0xcf   : > { %539 = vmax.xlane.f32.xlu1 %v514_v28 }
  0xd0   : > { %537 = vmax.xlane.f32.xlu0 %v513_v29 }
  0xd1   : > { %1149 = vmatpush3.bf16.msra.mxu0 %v1148_v59 }
  0xd2   : > { %1150 = vmatprep.subr.bf16.mxu0 %v1510_v53 }
  0xd3   : > { %497 = vadd.xlane.f32.xlu1 %v469_v30 }
  0xd4   : > { %481 = vadd.xlane.f32.xlu0 %v461_v31 }
  0xd5   : > { %1152 = vmatpush3.bf16.msra.mxu0 %v1151_v62 }
  0xd7   : > { %541 = vmax.xlane.f32.xlu1 %v515_v32  ;;  %v1863_v32 = vsub.s32 %v598_v24, %v588_v20 }
  0xd8   : > { %525 = vmax.xlane.f32.xlu0 %v507_v33  ;;  %v612_v33 = vadd.s32 4294967264, %v586_v19 }
  0xdb   : > { %499 = vadd.xlane.f32.xlu1 %v470_v34  ;;  %v619_v34 = vadd.s32 4294967256, %v586_v19 }
  0xdc   : > { %483 = vadd.xlane.f32.xlu0 %v462_v35 }
  0xdf   : > { %543 = vmax.xlane.f32.xlu1 %v516_v36 }
  0xe0   : > { %527 = vmax.xlane.f32.xlu0 %v508_v37  ;;  %v1865_v37 = vsub.s32 %v605_v25, %v588_v20 }
  0xe3   : > { %501 = vadd.xlane.f32.xlu1 %v471_v38 }
  0xe4   : > { %485 = vadd.xlane.f32.xlu0 %v463_v39 }
  0xe7   : > { %545 = vmax.xlane.f32.xlu1 %v517_v40  ;;  %v626_v40 = vadd.s32 4294967248, %v586_v19 }
  0xe8   : > { %529 = vmax.xlane.f32.xlu0 %v509_v41  ;;  %v633_v41 = vadd.s32 4294967240, %v586_v19 }
  0xe9   : > { %v1881_v56 = vsub.s32 %v626_v40, %v588_v20 }
  0xea   : > { %v1883_v57 = vsub.s32 %v633_v41, %v588_v20 }
  0xeb   : > { %503 = vadd.xlane.f32.xlu1 %v472_v42 }
  0xec   : > { %487 = vadd.xlane.f32.xlu0 %v464_v43 }
  0xef   : > { %547 = vmax.xlane.f32.xlu1 %v518_v44 }
  0xf0   : > { %531 = vmax.xlane.f32.xlu0 %v510_v45 }
  0xf3   : > { %549 = vmax.xlane.f32.xlu1 %v519_v46 }
  0xf4   : > { %533 = vmax.xlane.f32.xlu0 %v511_v47 }
  0xf7   : > { %551 = vmax.xlane.f32.xlu1 %v520_v48  ;;  %v1873_v48 = vsub.s32 %v612_v33, %v588_v20 }
  0xf8   : > { %535 = vmax.xlane.f32.xlu0 %v512_v49  ;;  %v1875_v49 = vsub.s32 %v619_v34, %v588_v20 }
 0x148   : > { %v490_v0 = vpop.xlane.xlu1 %489 }
 0x149   : > { %v474_v1 = vpop.xlane.xlu0 %473  ;;  %v561_v35 = vmul.f32 0.00390625, %v490_v0 }
 0x14a   : > { %v553_v36 = vmul.f32 0.00390625, %v474_v1 }
 0x14b   : > { %v643_v50 = vrot.slane %v561_v35, %v1859_v26 }
 0x14c   : > { %v492_v2 = vpop.xlane.xlu1 %491  ;;  %v590_v51 = vrot.slane %v553_v36, %v1859_v26 }
 0x14d   : > { %v476_v3 = vpop.xlane.xlu0 %475  ;;  %v562_v28 = vmul.f32 0.00390625, %v492_v2 }
 0x14e   : > { %v554_v29 = vmul.f32 0.00390625, %v476_v3 }
 0x14f   : > { %v647_v42 = vrot.slane %v562_v28, %v1861_v27 }
 0x150   : > { %v494_v4 = vpop.xlane.xlu1 %493  ;;  %v595_v43 = vrot.slane %v554_v29, %v1861_v27 }
 0x151   : > { %v478_v5 = vpop.xlane.xlu0 %477  ;;  %v563_v38 = vmul.f32 0.00390625, %v494_v4  ;;  %v648_v58 = vsel %vm596_vm1, %v647_v42, %v643_v50 }
 0x152   : > { %v555_v39 = vmul.f32 0.00390625, %v478_v5  ;;  %v597_v59 = vsel %vm596_vm1, %v595_v43, %v590_v51 }
 0x153   : > { %v652_v54 = vrot.slane %v563_v38, %v1863_v32 }
 0x154   : > { %v496_v6 = vpop.xlane.xlu1 %495  ;;  %v602_v55 = vrot.slane %v555_v39, %v1863_v32 }
 0x155   : > { %v480_v7 = vpop.xlane.xlu0 %479  ;;  %v564_v44 = vmul.f32 0.00390625, %v496_v6 }
 0x156   : > { %v556_v45 = vmul.f32 0.00390625, %v480_v7 }
 0x157   : > { %v657_v60 = vrot.slane %v564_v44, %v1865_v37 }
 0x158   : > { %v1843_v8 = vpop.xlane.xlu1 %523  ;;  %v609_v61 = vrot.slane %v556_v45, %v1865_v37 }
 0x159   : > { %v1845_v9 = vpop.xlane.xlu0 %521  ;;  %v705_v0 = vrot.slane %v1843_v8, %v1861_v27  ;;  %v604_v8 = vsel %vm603_vm2, %v602_v55, %v597_v59 }
 0x15a   : > { %v701_v1 = vrot.slane %v1845_v9, %v1859_v26 }
 0x15c   : > { %v1847_v10 = vpop.xlane.xlu1 %539  ;;  %v706_v24 = vsel %vm596_vm1, %v705_v0, %v701_v1 }
 0x15d   : > { %v1849_v11 = vpop.xlane.xlu0 %537  ;;  %v744_v2 = vrot.slane %v1847_v10, %v1861_v27  ;;  %v611_v10 = vsel %vm610_vm3, %v609_v61, %v604_v8 }
 0x15e   : > { %v740_v3 = vrot.slane %v1849_v11, %v1859_v26 }
 0x160   : > { %v498_v12 = vpop.xlane.xlu1 %497  ;;  %v745_v25 = vsel %vm596_vm1, %v744_v2, %v740_v3  ;;  %v871_v2 = vld [vmem:[#allocation10] sm:$0xf] }
 0x161   : > { %v482_v13 = vpop.xlane.xlu0 %481  ;;  %v565_v52 = vmul.f32 0.00390625, %v498_v12  ;;  %v653_v12 = vsel %vm603_vm2, %v652_v54, %v648_v58  ;;  %1137 = vmatpush3.msk.msra.mxu1 %vm883_vm12, %v871_v2 }
 0x162   : > { %v557_v53 = vmul.f32 0.00390625, %v482_v13  ;;  %v658_v9 = vsel %vm610_vm3, %v657_v60, %v653_v12 }
 0x163   : > { %v662_v4 = vrot.slane %v565_v52, %v1873_v48 }
 0x164   : > { %v1851_v14 = vpop.xlane.xlu1 %541  ;;  %v616_v5 = vrot.slane %v557_v53, %v1873_v48 }
 0x165   : > { %v1853_v15 = vpop.xlane.xlu0 %525  ;;  %v663_v26 = vsel %vm617_vm4, %v662_v4, %v658_v9 }
 0x166   : > { %v618_v27 = vsel %vm617_vm4, %v616_v5, %v611_v10 }
 0x168   : > { %v500_v17 = vpop.xlane.xlu1 %499 }
 0x169   : > { %v484_v18 = vpop.xlane.xlu0 %483  ;;  %v566_v6 = vmul.f32 0.00390625, %v500_v17  ;;  %v749_v17 = vrot.slane %v1851_v14, %v1863_v32 }
 0x16a   : > { %v558_v7 = vmul.f32 0.00390625, %v484_v18  ;;  %v710_v18 = vrot.slane %v1853_v15, %v1863_v32 }
 0x16b   : > { %v667_v28 = vrot.slane %v566_v6, %v1875_v49 }
 0x16c   : > { %v1855_v22 = vpop.xlane.xlu1 %543  ;;  %v623_v29 = vrot.slane %v558_v7, %v1875_v49  ;;  %v1098_v7 = vld [vmem:[#allocation12] ss:$0 sm:$0xff] }
 0x16d   : > { %v1857_v23 = vpop.xlane.xlu0 %527  ;;  %v668_v40 = vsel %vm624_vm5, %v667_v28, %v663_v26 }
 0x16e   : > { %v625_v41 = vsel %vm624_vm5, %v623_v29, %v618_v27 }
 0x170   : > { %v502_v30 = vpop.xlane.xlu1 %501 }
 0x171   : > { %v486_v31 = vpop.xlane.xlu0 %485  ;;  %v567_v13 = vmul.f32 0.00390625, %v502_v30  ;;  %v754_v30 = vrot.slane %v1855_v22, %v1865_v37  ;;  %v750_v22 = vsel %vm603_vm2, %v749_v17, %v745_v25 }
 0x172   : > { %v559_v16 = vmul.f32 0.00390625, %v486_v31  ;;  %v715_v31 = vrot.slane %v1857_v23, %v1865_v37  ;;  %v711_v23 = vsel %vm603_vm2, %v710_v18, %v706_v24 }
 0x173   : > { %v672_v14 = vrot.slane %v567_v13, %v1881_v56  ;;  %v755_v44 = vsel %vm610_vm3, %v754_v30, %v750_v22 }
 0x174   : > { %v1869_v46 = vpop.xlane.xlu1 %545  ;;  %v630_v15 = vrot.slane %v559_v16, %v1881_v56  ;;  %v716_v45 = vsel %vm610_vm3, %v715_v31, %v711_v23 }
 0x175   : > { %v1871_v47 = vpop.xlane.xlu0 %529  ;;  %v759_v32 = vrot.slane %v1869_v46, %v1873_v48  ;;  %v673_v46 = vsel %vm631_vm6, %v672_v14, %v668_v40 }
 0x176   : > { %v720_v33 = vrot.slane %v1871_v47, %v1873_v48  ;;  %v632_v47 = vsel %vm631_vm6, %v630_v15, %v625_v41 }
 0x177   : > { %v760_v48 = vsel %vm617_vm4, %v759_v32, %v755_v44 }
 0x178   : > { %v504_v62 = vpop.xlane.xlu1 %503 }
 0x179   : > { %v488_v63 = vpop.xlane.xlu0 %487  ;;  %v568_v19 = vmul.f32 0.00390625, %v504_v62 }
 0x17a   : > { %v560_v20 = vmul.f32 0.00390625, %v488_v63 }
 0x17b   : > { %v677_v34 = vrot.slane %v568_v19, %v1883_v57 }
 0x17c   : > { %v548_v11 = vpop.xlane.xlu1 %547  ;;  %v637_v35 = vrot.slane %v560_v20, %v1883_v57 }
 0x17d   : > { %v532_v21 = vpop.xlane.xlu0 %531  ;;  %v764_v37 = vrot.slane %v548_v11, %v1875_v49  ;;  %v678_v50 = vsel %vm638_vm7, %v677_v34, %v673_v46 }
 0x17e   : > { %v725_v39 = vrot.slane %v532_v21, %v1875_v49  ;;  %v721_v49 = vsel %vm617_vm4, %v720_v33, %v716_v45  ;;  %v639_v51 = vsel %vm638_vm7, %v637_v35, %v632_v47 }
 0x17f   : > { %v765_v54 = vsel %vm624_vm5, %v764_v37, %v760_v48  ;;  %v680_v63 = vsel %vm679_vm8, %v678_v50, %v639_v51 }
 0x180   : > { %v550_v36 = vpop.xlane.xlu1 %549  ;;  %v726_v55 = vsel %vm624_vm5, %v725_v39, %v721_v49 }
 0x181   : > { %v534_v38 = vpop.xlane.xlu0 %533  ;;  %v769_v42 = vrot.slane %v550_v36, %v1881_v56 }
 0x182   : > { %v730_v43 = vrot.slane %v534_v38, %v1881_v56 }
 0x183   : > { %v770_v59 = vsel %vm631_vm6, %v769_v42, %v765_v54 }
 0x184   : > { %v552_v52 = vpop.xlane.xlu1 %551  ;;  %v731_v60 = vsel %vm631_vm6, %v730_v43, %v726_v55 }
 0x185   : > { %v536_v53 = vpop.xlane.xlu0 %535  ;;  %v774_v56 = vrot.slane %v552_v52, %v1883_v57 }
 0x186   : > { %v735_v58 = vrot.slane %v536_v53, %v1883_v57  ;;  %v1096_v57 = vld [vmem:[#allocation9] ss:$0 sm:$0xff] }
 0x187   : > { %v775_v61 = vsel %vm638_vm7, %v774_v56, %v770_v59 }
 0x188   : > { %v736_v62 = vsel %vm638_vm7, %v735_v58, %v731_v60 }
 0x189   : > { %v777_v0 = vsel %vm776_vm9, %v775_v61, %v736_v62 }
 0x18a   : > { %v780_v1 = vsel %vm779_vm10, %v680_v63, %v777_v0 }
 0x18b   : > { %1134 = vmatmul.mubr.msk.f32.vlgmr.msra.gmra.mrb[0].mxu0 %vm796_vm11, %v780_v1 }
 0x25e   : > { %v866_v3 = vpop.f32.mrb[0].mxu0 }
 0x25f   : > { %v867_v4 = vadd.f32 %v1096_v57, %v866_v3  ;;  %v1135_v5 = vpop.f32.mrb[1].mxu0 }
 0x261   : > { %v870_v6 = vmax.f32 %v867_v4, 0.0 }
 0x263   : > { %1139 = vmatmul.mubr.msk.f32.vlgmr.msra.gmra.mrb[0].mxu1 %vm879_vm13, %v870_v6 }
 0x336   : > { %v953_v12 = vpop.f32.mrb[0].mxu1 }
 0x337   : > { %v954_v8 = vadd.f32 %v1098_v7, %v953_v12  ;;  %v1140_v13 = vpop.f32.mrb[1].mxu1 }
 0x339   : > { %v958_v16 = vrot.slane %v954_v8, 2 }
 0x33b   : > { %v960_v9 = vadd.f32 %v958_v16, %v954_v8 }
 0x33d   : > { %v1101_v10 = vmul.f32 -1.442695, %v960_v9 }
 0x33f   : > { %1264 = vpow2.f32 %v1101_v10 }
 0x349   : > { %v1265_v19 = vpop.eup %1264 }
 0x34a   : > { %v964_v20 = vadd.f32 1.0, %v1265_v19 }
 0x34c   : > { %1266 = vrcp.f32 %v964_v20 }
 0x356   : > { %v1267_v11 = vpop.eup %1266 }
 0x357   : > { %968 = vst.msk [vmem:[#allocation13] sm:$0x3] %vm967_vm14, %v1267_v11 }
 0x358 PF: > { %p1953_p12 = scmp.eq.s32.totalorder %s1079_s24, 1  ;;  %s1513_s25 = smov [#allocation13]  }
 0x359   : > { %s978_s26 = sshll.u32 %s1513_s25, 4  ;;  %s979_s26 = int_to_ptr.vmem [resolvable:$true] %s978_s26 }
 0x35a   : > { %s1410_s27 = scalar_lea.vmem %s979_s26, 32  ;;  %p1417_p0 = scmp.lt.s32.totalorder %s979_s26, %s979_s26 }
 0x35b   : > { %p1411_p4 = scmp.ne.s32.totalorder %s979_s26, %s1410_s27  ;;  %p1418_p2 = scmp.lt.s32.totalorder %s1410_s27, %s1410_s27 }
 0x35d   : > { %p1412_p5 = pnand %p1411_p4, %p1953_p12  ;;  %p1419_p6 = por %p1418_p2, %p1417_p0 }
 0x35f   : > { %p1413_p13 = pneg %p1412_p5 }
 0x361   : > { %p1420_p10 = pnand %p1419_p6, %p1413_p13 }
 0x363   : > { %1423 = shalt.err (!%p1420_p10)
}
 0x364   : > { %s1424_s24 = scalar_lea.hbm %s2002_s5, 32 }
 0x365   : > { %p1425_p1 = scmp.ne.s32.totalorder %s2002_s5, %s1424_s24  ;;  %p1430_p11 = scmp.lt.u32.totalorder %s1424_s24, %s2002_s5 }
 0x367   : > { %p1426_p3 = pnand %p1425_p1, %p1953_p12 }
 0x369   : > { %p1427_p8 = pneg %p1426_p3 }
 0x36b   : > { %p1432_p7 = pnand %p1430_p11, %p1427_p8 }
 0x36d   : > { %1435 = shalt.err (!%p1432_p7)
}
 0x36e   : > { %1172 = dma.vmem_to_hbm [thread:$0]  (%p1953_p12), %s979_s26, 32, %s2002_s5, [#allocation6]  }
 0x36f   : > { %1473 = dma.done.wait (%p1953_p12), [#allocation6], 32  }
 0x370   : > { %1475 = vsyncadd (%p1953_p12), [#allocation6], 4294967264 }
 0x371 PF: > { %s21_s23 = sadd.s32 1, %s1498_s23   ;;  %s2017_s16 = smov %s1711_s18 }
 0x372   : > { %p18_p9 = scmp.ge.s32.totalorder %s21_s23, 4   ;;  %s2018_s18 = smov %s1482_s19 }
 0x373   : > { %s2019_s19 = smov %s1486_s20  ;;  %s2020_s20 = smov %s2017_s16 }
 0x374   : > { %s2021_s21 = smov %s1494_s22  ;;  %s2022_s22 = smov %s2024_s15 }
 0x375   :  { %20 = sbr.rel (!%p18_p9) target bundleno = 7 (0x7), region = 102 }
 0x37c   :  { %991 = vsyncpa [#allocation5], 1 }
 0x37d   :  { %993 = vsyncpa [#allocation5 + $0x1], 1 }
 0x37e   :  { %994 = vsyncpa [#allocation8], 1 }
 0x37f   :  { %995 = vsyncpa [#allocation11], 1 }
 0x380   :  { %996 = vsyncpa [#allocation6], 1 }
 0x381   :  { %998 = vsyncpa [#allocation6 + $0x1], 1 }

</bundles_post_ra>
